<compile_context>
chip_gen: v7x
topology: tpu7x:2x2x1
jax: 0.10.0
libtpu: 0.0.40
codegen_flags: <defaults>
</compile_context>

<pallas_src>
import math
from functools import partial

import jax
import jax.numpy as jnp
from jax.experimental import pallas as pl
from jax.experimental.pallas import tpu as pltpu


def plasma_mlp_kernel(*refs, act_dtype):
    """MLP forward on one [*, TILE_N] batch tile (feature-major layout).

    refs = (inp_ref, w0, b0, w1, b1, ..., wL, bL, out_ref)
      inp_ref : [3, TILE_N]            f32
      w_l     : [out_l, in_l]          f32 (PyTorch nn.Linear layout)
      b_l     : [out_l, 1]             f32
      out_ref : [O_pad, TILE_N]        f32
    act_dtype: activation dtype for the tanh chain (f32, or bf16 on v6e/v7x).
    """
    inp_ref, out_ref = refs[0], refs[-1]
    param_refs = refs[1:-1]
    num_layers = len(param_refs) // 2

    inp = inp_ref[...]                               # [3, TILE_N]
    w0 = param_refs[0][...]                          # [H, 3]
    b0 = param_refs[1][...]                          # [H, 1]

    # First layer: K=3 contraction as three rank-1 VPU FMAs (frees the MXU
    # from its worst-shaped matmul).
    h = (w0[:, 0:1] * inp[0:1, :]
         + w0[:, 1:2] * inp[1:2, :]
         + w0[:, 2:3] * inp[2:3, :]
         + b0)
    # tanh runs on the single EUP slot; bf16 roughly doubles its throughput
    # on v6e/v7x.  (act_dtype == f32 on v5e / for exact reference match.)
    h = jnp.tanh(h.astype(act_dtype))                # [H, TILE_N]

    for l in range(1, num_layers):
        w_ref = param_refs[2 * l]
        b = param_refs[2 * l + 1][...]               # [out_l, 1]
        if l < num_layers - 1:
            w = w_ref[...].astype(act_dtype)         # tiny per-step cast
            h = jnp.dot(w, h, preferred_element_type=jnp.float32) + b
            h = jnp.tanh(h.astype(act_dtype))
        else:
            # Final projection in f32 (tiny MXU cost; limits bf16 error growth).
            h = jnp.dot(w_ref[...], h.astype(jnp.float32),
                        preferred_element_type=jnp.float32) + b

    out_ref[...] = h.astype(out_ref.dtype)           # [O_pad, TILE_N]


def _round_up(v, m):
    return ((v + m - 1) // m) * m


def _supports_bf16_eup():
    """bf16 VPU/EUP exists on v6e/v7x but not on v5e and earlier."""
    try:
        kind = jax.devices()[0].device_kind.lower()
    except Exception:
        return False
    return ("v6" in kind) or ("v7" in kind)


def init_params(key, hidden_layers, neurons_per_layer, output_size):
    """PyTorch nn.Linear-style init; weights stored (out, in), biases (out, 1)."""
    dims = [3] + [neurons_per_layer] * hidden_layers + [output_size]
    params = []
    for i in range(len(dims) - 1):
        fan_in, fan_out = dims[i], dims[i + 1]
        key, kw, kb = jax.random.split(key, 3)
        bound = 1.0 / math.sqrt(fan_in)
        w = jax.random.uniform(kw, (fan_out, fan_in), jnp.float32, -bound, bound)
        b = jax.random.uniform(kb, (fan_out, 1), jnp.float32, -bound, bound)
        params.append((w, b))
    return params


@partial(jax.jit,
         static_argnames=("num_species", "tile_n", "use_bf16_tanh",
                          "feature_major"))
def plasma_net_forward(x, y, t, params, num_species, tile_n=16384,
                       use_bf16_tanh=False, feature_major=False):
    """x, y, t: [N, 1] f32.

    Returns (list of per-species arrays, fields).  With feature_major=False
    (PyTorch semantics) species are [N, 4] and fields [N, 6]; with
    feature_major=True they stay [4, N] / [6, N] (no transpose pass at all).
    """
    n = x.shape[0]
    output_size = num_species * 4 + 6
    out_pad = _round_up(output_size, 8)        # unmasked sublane-aligned stores
    hidden = params[0][0].shape[0]

    # ---------------- tile selection ----------------
    tile_n = max(128, _round_up(tile_n, 128))
    n_pad = _round_up(n, 128)
    tile = min(tile_n, n_pad)

    # Cap the tile so the per-step VMEM working set (double-buffered IO blocks
    # + ~4 live [hidden, tile] f32 temporaries) stays well under budget.
    per_col_bytes = 4 * (2 * 3 + 2 * out_pad + 4 * hidden)
    vmem_budget = 40 << 20
    max_tile = max(128, (vmem_budget // per_col_bytes) // 128 * 128)
    tile = min(tile, max_tile)

    # v7x: keep >= 2 grid steps on large batches so both TensorCores get work.
    if n_pad >= 2048 and pl.cdiv(n_pad, tile) < 2:
        tile = _round_up(pl.cdiv(n_pad, 2), 128)

    assert tile % 128 == 0, "batch tile must be lane-aligned (multiple of 128)"
    n_pad = _round_up(n_pad, tile)

    # ---------------- inputs: feature-major [3, n_pad], built cheaply --------
    # reshape of [N,1] -> [1,N] is free; one concat, one pad.
    inputs = jnp.concatenate(
        [x.reshape(1, n), y.reshape(1, n), t.reshape(1, n)], axis=0)   # [3, N]
    if n_pad != n:
        inputs = jnp.pad(inputs, ((0, 0), (0, n_pad - n)))

    # ---------------- params: pad last layer rows to out_pad -----------------
    flat_params = []
    for li, (w, b) in enumerate(params):
        if li == len(params) - 1 and out_pad != output_size:
            w = jnp.pad(w, ((0, out_pad - output_size), (0, 0)))
            b = jnp.pad(b, ((0, out_pad - output_size), (0, 0)))
        flat_params.extend([w, b])

    grid = (pl.cdiv(n_pad, tile),)

    in_specs = [pl.BlockSpec((3, tile), lambda i: (0, i))]
    for p in flat_params:
        # Constant index_map -> block never changes -> stays VMEM-resident.
        in_specs.append(pl.BlockSpec(p.shape, lambda i: (0, 0)))
    out_specs = pl.BlockSpec((out_pad, tile), lambda i: (0, i))

    # Advisory cost estimate for the XLA scheduler.
    num_layers = len(params)
    ws = [flat_params[2 * i] for i in range(num_layers)]
    bs = [flat_params[2 * i + 1] for i in range(num_layers)]
    flops = 2 * n_pad * sum(int(w.shape[0]) * int(w.shape[1]) for w in ws)
    transcendentals = n_pad * sum(int(w.shape[0]) for w in ws[:-1])
    param_bytes = sum(int(w.size) * 4 for w in ws) + sum(int(b.size) * 4 for b in bs)
    bytes_accessed = 4 * n_pad * (3 + out_pad) + param_bytes

    # Explicit scoped-VMEM limit: v5e defaults to 16 MiB which is too small for
    # large tiles; 32-48 MiB is safe on v5e/v6e/v7x.
    vmem_limit = int(min(48 << 20,
                         max(32 << 20,
                             per_col_bytes * tile + param_bytes + (2 << 20))))

    act_dtype = jnp.bfloat16 if use_bf16_tanh else jnp.float32

    out_fm = pl.pallas_call(
        partial(plasma_mlp_kernel, act_dtype=act_dtype),
        out_shape=jax.ShapeDtypeStruct((out_pad, n_pad), jnp.float32),
        grid=grid,
        in_specs=in_specs,
        out_specs=out_specs,
        compiler_params=pltpu.CompilerParams(
            dimension_semantics=("parallel",),
            vmem_limit_bytes=vmem_limit),
        cost_estimate=pl.CostEstimate(
            flops=flops,
            transcendentals=transcendentals,
            bytes_accessed=bytes_accessed),
    )(inputs, *flat_params)

    # ---------------- glue: per-slab slices, no full-output transpose --------
    base = 4 * num_species
    if feature_major:
        species_outputs = [out_fm[4 * i:4 * i + 4, :n] for i in range(num_species)]
        fields = out_fm[base:base + 6, :n]
    else:
        # Only small [4, n] / [6, n] slabs are transposed (fused slice+copy),
        # instead of a full [out_pad, n_pad] -> [n, out_pad] HBM pass.
        species_outputs = [out_fm[4 * i:4 * i + 4, :n].T for i in range(num_species)]
        fields = out_fm[base:base + 6, :n].T
    return species_outputs, fields


def reference_forward(x, y, t, params, num_species):
    """Pure-JAX reference (PyTorch semantics: h @ W.T + b), f32."""
    h = jnp.concatenate([x, y, t], axis=1)
    for i, (w, b) in enumerate(params):
        h = h @ w.T + b[:, 0]
        if i < len(params) - 1:
            h = jnp.tanh(h)
    outs = [h[:, 4 * i:4 * i + 4] for i in range(num_species)]
    fields = h[:, 4 * num_species:4 * num_species + 6]
    return outs, fields


if __name__ == "__main__":
    # Small, deterministic configuration consistent with the module.
    species_list = ["e", "Ar+"]          # num_species = 2
    hidden_layers = 3
    neurons_per_layer = 32
    num_species = len(species_list)
    output_size = num_species * 4 + 6    # 14

    batch = 8
    key = jax.random.PRNGKey(0)
    key, kx, ky_, kt, kp = jax.random.split(key, 5)
    x = jax.random.normal(kx, (batch, 1), jnp.float32)
    y = jax.random.normal(ky_, (batch, 1), jnp.float32)
    t = jax.random.normal(kt, (batch, 1), jnp.float32)

    params = init_params(kp, hidden_layers, neurons_per_layer, output_size)
    ref_species, ref_fields = reference_forward(x, y, t, params, num_species)

    # f32 path: must match the PyTorch / pure-JAX reference to 1e-5.
    species_out, fields = plasma_net_forward(x, y, t, params, num_species)
    species_out = [jax.block_until_ready(s) for s in species_out]
    fields = jax.block_until_ready(fields)

    for s, rs in zip(species_out, ref_species):
        assert s.shape == (batch, 4)
        assert jnp.allclose(s, rs, atol=1e-5, rtol=1e-5)
    assert fields.shape == (batch, 6)
    assert jnp.allclose(fields, ref_fields, atol=1e-5, rtol=1e-5)

    # bf16-tanh path: v6e/v7x only (no bf16 EUP/VPU on v5e); agreement with the
    # f32 reference is only ~1e-2 level, so the tolerance is relaxed.
    if _supports_bf16_eup():
        sp_bf, f_bf = plasma_net_forward(x, y, t, params, num_species,
                                         use_bf16_tanh=True)
        sp_bf = [jax.block_until_ready(s) for s in sp_bf]
        f_bf = jax.block_until_ready(f_bf)
        for s, rs in zip(sp_bf, ref_species):
            assert s.shape == (batch, 4)
            assert jnp.allclose(s, rs, atol=1e-1, rtol=1e-1)
        assert f_bf.shape == (batch, 6)
        assert jnp.allclose(f_bf, ref_fields, atol=1e-1, rtol=1e-1)

    print("KERNEL_OK")
</pallas_src>

<mosaic_0001>
module attributes {stable_mosaic.version = 11 : i64} {
  func.func @plasma_mlp_kernel(%arg0: i32, %arg1: memref<3x128xf32, #tpu.memory_space<vmem>>, %arg2: memref<32x3xf32, #tpu.memory_space<vmem>>, %arg3: memref<32x1xf32, #tpu.memory_space<vmem>>, %arg4: memref<32x32xf32, #tpu.memory_space<vmem>>, %arg5: memref<32x1xf32, #tpu.memory_space<vmem>>, %arg6: memref<32x32xf32, #tpu.memory_space<vmem>>, %arg7: memref<32x1xf32, #tpu.memory_space<vmem>>, %arg8: memref<16x32xf32, #tpu.memory_space<vmem>>, %arg9: memref<16x1xf32, #tpu.memory_space<vmem>>, %arg10: memref<16x128xf32, #tpu.memory_space<vmem>>) attributes {dimension_semantics = [#tpu.dimension_semantics<parallel>], iteration_bounds = array<i64: 1>, scalar_prefetch = 0 : i64, scratch_operands = 0 : i64, tpu.core_type = #tpu.core_type<tc>, window_params = [{transform_indices = @transform_0, window_bounds = array<i64: 3, 128>}, {pipeline_mode = #tpu.pipeline_mode<synchronous>, transform_indices = @transform_1, window_bounds = array<i64: 32, 3>}, {pipeline_mode = #tpu.pipeline_mode<synchronous>, transform_indices = @transform_2, window_bounds = array<i64: 32, 1>}, {pipeline_mode = #tpu.pipeline_mode<synchronous>, transform_indices = @transform_3, window_bounds = array<i64: 32, 32>}, {pipeline_mode = #tpu.pipeline_mode<synchronous>, transform_indices = @transform_4, window_bounds = array<i64: 32, 1>}, {pipeline_mode = #tpu.pipeline_mode<synchronous>, transform_indices = @transform_5, window_bounds = array<i64: 32, 32>}, {pipeline_mode = #tpu.pipeline_mode<synchronous>, transform_indices = @transform_6, window_bounds = array<i64: 32, 1>}, {pipeline_mode = #tpu.pipeline_mode<synchronous>, transform_indices = @transform_7, window_bounds = array<i64: 16, 32>}, {pipeline_mode = #tpu.pipeline_mode<synchronous>, transform_indices = @transform_8, window_bounds = array<i64: 16, 1>}, {transform_indices = @transform_9, window_bounds = array<i64: 16, 128>}]} {
    %c0 = arith.constant 0 : index
    %c0_0 = arith.constant 0 : index
    %0 = vector.load %arg1[%c0, %c0_0] : memref<3x128xf32, #tpu.memory_space<vmem>>, vector<3x128xf32>
    %c0_1 = arith.constant 0 : index
    %c0_2 = arith.constant 0 : index
    %1 = vector.load %arg2[%c0_1, %c0_2] : memref<32x3xf32, #tpu.memory_space<vmem>>, vector<32x3xf32>
    %c0_3 = arith.constant 0 : index
    %c0_4 = arith.constant 0 : index
    %2 = vector.load %arg3[%c0_3, %c0_4] : memref<32x1xf32, #tpu.memory_space<vmem>>, vector<32x1xf32>
    %3 = vector.extract_strided_slice %1 {offsets = [0, 0], sizes = [32, 1], strides = [1, 1]} : vector<32x3xf32> to vector<32x1xf32>
    %4 = vector.extract_strided_slice %0 {offsets = [0, 0], sizes = [1, 128], strides = [1, 1]} : vector<3x128xf32> to vector<1x128xf32>
    %5 = vector.broadcast %3 : vector<32x1xf32> to vector<32x128xf32>
    %6 = vector.broadcast %4 : vector<1x128xf32> to vector<32x128xf32>
    %7 = arith.mulf %5, %6 : vector<32x128xf32>
    %8 = vector.extract_strided_slice %1 {offsets = [0, 1], sizes = [32, 1], strides = [1, 1]} : vector<32x3xf32> to vector<32x1xf32>
    %9 = vector.extract_strided_slice %0 {offsets = [1, 0], sizes = [1, 128], strides = [1, 1]} : vector<3x128xf32> to vector<1x128xf32>
    %10 = vector.broadcast %8 : vector<32x1xf32> to vector<32x128xf32>
    %11 = vector.broadcast %9 : vector<1x128xf32> to vector<32x128xf32>
    %12 = arith.mulf %10, %11 : vector<32x128xf32>
    %13 = arith.addf %7, %12 : vector<32x128xf32>
    %14 = vector.extract_strided_slice %1 {offsets = [0, 2], sizes = [32, 1], strides = [1, 1]} : vector<32x3xf32> to vector<32x1xf32>
    %15 = vector.extract_strided_slice %0 {offsets = [2, 0], sizes = [1, 128], strides = [1, 1]} : vector<3x128xf32> to vector<1x128xf32>
    %16 = vector.broadcast %14 : vector<32x1xf32> to vector<32x128xf32>
    %17 = vector.broadcast %15 : vector<1x128xf32> to vector<32x128xf32>
    %18 = arith.mulf %16, %17 : vector<32x128xf32>
    %19 = arith.addf %13, %18 : vector<32x128xf32>
    %20 = vector.broadcast %2 : vector<32x1xf32> to vector<32x128xf32>
    %21 = arith.addf %19, %20 : vector<32x128xf32>
    %22 = math.tanh %21 : vector<32x128xf32>
    %c0_5 = arith.constant 0 : index
    %c0_6 = arith.constant 0 : index
    %23 = vector.load %arg5[%c0_5, %c0_6] : memref<32x1xf32, #tpu.memory_space<vmem>>, vector<32x1xf32>
    %c0_7 = arith.constant 0 : index
    %c0_8 = arith.constant 0 : index
    %24 = vector.load %arg4[%c0_7, %c0_8] : memref<32x32xf32, #tpu.memory_space<vmem>>, vector<32x32xf32>
    %cst = arith.constant dense<0.000000e+00> : vector<32x128xf32>
    %25 = tpu.matmul %24, %22, %cst {dimension_numbers = #tpu.dot_dimension_numbers<[1], [0], [0], [1], [0, 0, 1, 1], [], []>} : vector<32x32xf32>, vector<32x128xf32>, vector<32x128xf32> -> vector<32x128xf32>
    %26 = vector.broadcast %23 : vector<32x1xf32> to vector<32x128xf32>
    %27 = arith.addf %25, %26 : vector<32x128xf32>
    %28 = math.tanh %27 : vector<32x128xf32>
    %c0_9 = arith.constant 0 : index
    %c0_10 = arith.constant 0 : index
    %29 = vector.load %arg7[%c0_9, %c0_10] : memref<32x1xf32, #tpu.memory_space<vmem>>, vector<32x1xf32>
    %c0_11 = arith.constant 0 : index
    %c0_12 = arith.constant 0 : index
    %30 = vector.load %arg6[%c0_11, %c0_12] : memref<32x32xf32, #tpu.memory_space<vmem>>, vector<32x32xf32>
    %cst_13 = arith.constant dense<0.000000e+00> : vector<32x128xf32>
    %31 = tpu.matmul %30, %28, %cst_13 {dimension_numbers = #tpu.dot_dimension_numbers<[1], [0], [0], [1], [0, 0, 1, 1], [], []>} : vector<32x32xf32>, vector<32x128xf32>, vector<32x128xf32> -> vector<32x128xf32>
    %32 = vector.broadcast %29 : vector<32x1xf32> to vector<32x128xf32>
    %33 = arith.addf %31, %32 : vector<32x128xf32>
    %34 = math.tanh %33 : vector<32x128xf32>
    %c0_14 = arith.constant 0 : index
    %c0_15 = arith.constant 0 : index
    %35 = vector.load %arg9[%c0_14, %c0_15] : memref<16x1xf32, #tpu.memory_space<vmem>>, vector<16x1xf32>
    %c0_16 = arith.constant 0 : index
    %c0_17 = arith.constant 0 : index
    %36 = vector.load %arg8[%c0_16, %c0_17] : memref<16x32xf32, #tpu.memory_space<vmem>>, vector<16x32xf32>
    %cst_18 = arith.constant dense<0.000000e+00> : vector<16x128xf32>
    %37 = tpu.matmul %36, %34, %cst_18 {dimension_numbers = #tpu.dot_dimension_numbers<[1], [0], [0], [1], [0, 0, 1, 1], [], []>} : vector<16x32xf32>, vector<32x128xf32>, vector<16x128xf32> -> vector<16x128xf32>
    %38 = vector.broadcast %35 : vector<16x1xf32> to vector<16x128xf32>
    %39 = arith.addf %37, %38 : vector<16x128xf32>
    %c0_19 = arith.constant 0 : index
    %c0_20 = arith.constant 0 : index
    %40 = vector.load %arg10[%c0_19, %c0_20] : memref<16x128xf32, #tpu.memory_space<vmem>>, vector<16x128xf32>
    tpu.vector_store %arg10[%c0_19, %c0_20], %39 {strides = array<i32>} : memref<16x128xf32, #tpu.memory_space<vmem>>, vector<16x128xf32>,
    return
  }
  func.func @transform_0(%arg0: i32) -> (i32, i32) {
    %c0_i32 = arith.constant 0 : i32
    %c0_i32_0 = arith.constant 0 : i32
    return %c0_i32, %arg0 : i32, i32
  }
  func.func @transform_1(%arg0: i32) -> (i32, i32) {
    %c0_i32 = arith.constant 0 : i32
    %c0_i32_0 = arith.constant 0 : i32
    %c0_i32_1 = arith.constant 0 : i32
    return %c0_i32, %c0_i32_0 : i32, i32
  }
  func.func @transform_2(%arg0: i32) -> (i32, i32) {
    %c0_i32 = arith.constant 0 : i32
    %c0_i32_0 = arith.constant 0 : i32
    %c0_i32_1 = arith.constant 0 : i32
    return %c0_i32, %c0_i32_0 : i32, i32
  }
  func.func @transform_3(%arg0: i32) -> (i32, i32) {
    %c0_i32 = arith.constant 0 : i32
    %c0_i32_0 = arith.constant 0 : i32
    %c0_i32_1 = arith.constant 0 : i32
    return %c0_i32, %c0_i32_0 : i32, i32
  }
  func.func @transform_4(%arg0: i32) -> (i32, i32) {
    %c0_i32 = arith.constant 0 : i32
    %c0_i32_0 = arith.constant 0 : i32
    %c0_i32_1 = arith.constant 0 : i32
    return %c0_i32, %c0_i32_0 : i32, i32
  }
  func.func @transform_5(%arg0: i32) -> (i32, i32) {
    %c0_i32 = arith.constant 0 : i32
    %c0_i32_0 = arith.constant 0 : i32
    %c0_i32_1 = arith.constant 0 : i32
    return %c0_i32, %c0_i32_0 : i32, i32
  }
  func.func @transform_6(%arg0: i32) -> (i32, i32) {
    %c0_i32 = arith.constant 0 : i32
    %c0_i32_0 = arith.constant 0 : i32
    %c0_i32_1 = arith.constant 0 : i32
    return %c0_i32, %c0_i32_0 : i32, i32
  }
  func.func @transform_7(%arg0: i32) -> (i32, i32) {
    %c0_i32 = arith.constant 0 : i32
    %c0_i32_0 = arith.constant 0 : i32
    %c0_i32_1 = arith.constant 0 : i32
    return %c0_i32, %c0_i32_0 : i32, i32
  }
  func.func @transform_8(%arg0: i32) -> (i32, i32) {
    %c0_i32 = arith.constant 0 : i32
    %c0_i32_0 = arith.constant 0 : i32
    %c0_i32_1 = arith.constant 0 : i32
    return %c0_i32, %c0_i32_0 : i32, i32
  }
  func.func @transform_9(%arg0: i32) -> (i32, i32) {
    %c0_i32 = arith.constant 0 : i32
    %c0_i32_0 = arith.constant 0 : i32
    return %c0_i32, %arg0 : i32, i32
  }
}

</mosaic_0001>

<bundles_post_ra>
// kernel: plasma_net_forward.1
= control target key start
LH: loop header
LB: loop body
LE: loop exit
PB: predicated region body
PF: predicated region fallthrough
CT: control target
= control target key end

     0   :  { %v643_v0 = vmov 2   ;;  %v644_v1 = vmov 1   ;;  %v645_v5 = vmov 0   ;;  %vm181_vm0 = vcmask 261120   ;;  %s799_s1 = inlined_call_operand.vmem [shape: f32[32,3], index: 1, kind: input, shape index: {}]   ;;  %s800_s2 = inlined_call_operand.vmem [shape: f32[32,1], index: 2, kind: input, shape index: {}]   ;;  %s801_s4 = inlined_call_operand.vmem [shape: f32[32,1], index: 4, kind: input, shape index: {}]   ;;  %s802_s6 = inlined_call_operand.vmem [shape: f32[32,1], index: 6, kind: input, shape index: {}]   ;;  %s803_s8 = inlined_call_operand.vmem [shape: f32[16,1], index: 8, kind: input, shape index: {}]   ;;  %s804_s3 = inlined_call_operand.vmem [shape: f32[32,32], index: 3, kind: input, shape index: {}]   ;;  %s805_s0 = inlined_call_operand.vmem [shape: f32[3,128], index: 0, kind: input, shape index: {}]   ;;  %s806_s5 = inlined_call_operand.vmem [shape: f32[32,32], index: 5, kind: input, shape index: {}]   ;;  %s807_s7 = inlined_call_operand.vmem [shape: f32[16,32], index: 7, kind: input, shape index: {}]   ;;  %s808_s9 = inlined_call_operand.vmem [shape: f32[16,128], index: 9, kind: output, shape index: {}]  }
   0x1   :  { %612 = vset.pattern.permute.xlu0 %v643_v0  ;;  %611 = vset.pattern.permute.xlu1 %v644_v1  ;;  %v33_v2 = vld [vmem:[%s799_s1] sm:$0xff]  ;;  %v35_v3 = vld [vmem:[%s799_s1 + $0x10] sm:$0xff]  ;;  %v34_v4 = vld [vmem:[%s799_s1 + $0x8] sm:$0xff]  ;;  %v61_v26 = vlaneseq }
   0x2   :  { %98 = vperm.xlu0 %612, %v33_v2   ;;  %70 = vperm.xlu1 %611, %v33_v2   ;;  %v36_v6 = vld [vmem:[%s799_s1 + $0x18] sm:$0xff]  ;;  %v38_v7 = vld [vmem:[%s800_s2 + $0x8] sm:$0xff]  ;;  %v153_v8 = vld [vmem:[%s801_s4] sm:$0xff] }
   0x3   :  { %v155_v9 = vld [vmem:[%s801_s4 + $0x10] sm:$0xff]  ;;  %v283_v10 = vld [vmem:[%s802_s6] sm:$0xff]  ;;  %v40_v15 = vld [vmem:[%s800_s2 + $0x18] sm:$0xff]  ;;  %v62_v29 = vshrl.u32 %v61_v26, 7 }
   0x4   :  { %v37_v11 = vld [vmem:[%s800_s2] sm:$0xff]  ;;  %v285_v12 = vld [vmem:[%s802_s6 + $0x10] sm:$0xff]  ;;  %v154_v16 = vld [vmem:[%s801_s4 + $0x8] sm:$0xff] }
   0x5   :  { %v39_v13 = vld [vmem:[%s800_s2 + $0x10] sm:$0xff]  ;;  %v412_v14 = vld [vmem:[%s803_s8] sm:$0xff]  ;;  %v156_v17 = vld [vmem:[%s801_s4 + $0x18] sm:$0xff]  ;;  %v63_v31 = vsub.s32 0, %v62_v29  ;;  %v87_v33 = vsub.s32 1, %v62_v29  ;;  %v115_v35 = vsub.s32 2, %v62_v29 }
   0x6   :  { %106 = vperm.xlu0 %612, %v35_v3   ;;  %74 = vperm.xlu1 %611, %v34_v4   ;;  %v284_v18 = vld [vmem:[%s802_s6 + $0x8] sm:$0xff]  ;;  %v286_v19 = vld [vmem:[%s802_s6 + $0x18] sm:$0xff]  ;;  %v157_v21 = vld [vmem:[%s804_s3] sm:$0xff] }
   0x7   :  { %v413_v20 = vld [vmem:[%s803_s8 + $0x8] sm:$0xff]  ;;  %553 = vmatprep.mubr.msk.f32.mxu0 %vm181_vm0, %v157_v21  ;;  %v32_v34 = vld [vmem:[%s805_s0] sm:$0x7] }
   0x8   :  { %v64_v36 = vrot.slane %v32_v34, %v63_v31  ;;  %v88_v38 = vrot.slane %v32_v34, %v87_v33  ;;  %v116_v41 = vrot.slane %v32_v34, %v115_v35  ;;  %v288_v35 = vld [vmem:[%s806_s5 + $0x8] sm:$0xff] }
   0xa   :  { %616 = vset.pattern.permute.xlu0 %v645_v5  ;;  %613 = vset.pattern.permute.xlu1 %v643_v0 }
   0xb   :  { %43 = vperm.xlu0 %616, %v33_v2   ;;  %102 = vperm.xlu1 %613, %v34_v4  }
   0xf   :  { %48 = vperm.xlu0 %616, %v34_v4   ;;  %614 = vset.pattern.permute.xlu1 %v645_v5 }
  0x10   :  { %53 = vperm.xlu1 %614, %v35_v3  }
  0x13   :  { %58 = vperm.xlu0 %616, %v36_v6  }
  0x14   :  { %615 = vset.pattern.permute.xlu1 %v644_v1 }
  0x15   :  { %78 = vperm.xlu1 %615, %v35_v3  }
  0x17   :  { %132 = vperm.xlu0 %616, %v38_v7  }
  0x19   :  { %82 = vperm.xlu1 %615, %v36_v6  }
  0x1b   :  { %163 = vperm.xlu0 %616, %v153_v8  }
  0x1d   :  { %617 = vset.pattern.permute.xlu1 %v643_v0 }
  0x1e   :  { %110 = vperm.xlu1 %617, %v36_v6  }
  0x1f   :  { %173 = vperm.xlu0 %616, %v155_v9  }
  0x22   :  { %618 = vset.pattern.permute.xlu1 %v645_v5 }
  0x23   :  { %293 = vperm.xlu0 %616, %v283_v10   ;;  %127 = vperm.xlu1 %618, %v37_v11  }
  0x27   :  { %303 = vperm.xlu0 %616, %v285_v12   ;;  %137 = vperm.xlu1 %618, %v39_v13   ;;  %v158_v13 = vld [vmem:[%s804_s3 + $0x8] sm:$0xff] }
  0x2b   :  { %418 = vperm.xlu0 %616, %v412_v14   ;;  %142 = vperm.xlu1 %618, %v40_v15   ;;  %v159_v14 = vld [vmem:[%s804_s3 + $0x10] sm:$0xff]  ;;  %v160_v15 = vld [vmem:[%s804_s3 + $0x18] sm:$0xff] }
  0x2f   :  { %168 = vperm.xlu1 %618, %v154_v16   ;;  %v287_v16 = vld [vmem:[%s806_s5] sm:$0xff] }
  0x30   :  { %567 = vmatprep.mubr.msk.f32.mxu1 %vm181_vm0, %v287_v16 }
  0x33   :  { %178 = vperm.xlu1 %618, %v156_v17  }
  0x37   :  { %298 = vperm.xlu1 %618, %v284_v18  }
  0x3b   :  { %308 = vperm.xlu1 %618, %v286_v19  }
  0x3f   :  { %423 = vperm.xlu1 %618, %v413_v20  }
  0x81   :  { %v71_v22 = vpop.permute.xlu1 %70  ;;  %v99_v23 = vpop.permute.xlu0 %98 }
  0x82   :  { %v89_v46 = vmul.f32 %v88_v38, %v71_v22  ;;  %v117_v48 = vmul.f32 %v116_v41, %v99_v23 }
  0x85   :  { %v75_v24 = vpop.permute.xlu1 %74  ;;  %v107_v25 = vpop.permute.xlu0 %106 }
  0x86   :  { %v90_v42 = vmul.f32 %v88_v38, %v75_v24  ;;  %v119_v62 = vmul.f32 %v116_v41, %v107_v25 }
  0x8a   :  { %v103_v27 = vpop.permute.xlu1 %102  ;;  %v44_v28 = vpop.permute.xlu0 %43 }
  0x8b   :  { %v65_v44 = vmul.f32 %v64_v36, %v44_v28  ;;  %v118_v47 = vmul.f32 %v116_v41, %v103_v27 }
  0x8d   :  { %v93_v49 = vadd.f32 %v89_v46, %v65_v44 }
  0x8e   :  { %v49_v32 = vpop.permute.xlu0 %48 }
  0x8f   :  { %v54_v30 = vpop.permute.xlu1 %53  ;;  %v66_v39 = vmul.f32 %v64_v36, %v49_v32  ;;  %v121_v56 = vadd.f32 %v117_v48, %v93_v49 }
  0x90   :  { %v67_v54 = vmul.f32 %v64_v36, %v54_v30 }
  0x91   :  { %v94_v45 = vadd.f32 %v90_v42, %v66_v39 }
  0x92   :  { %v59_v40 = vpop.permute.xlu0 %58 }
  0x93   :  { %v122_v53 = vadd.f32 %v118_v47, %v94_v45  ;;  %v68_v59 = vmul.f32 %v64_v36, %v59_v40  ;;  %v289_v36 = vld [vmem:[%s806_s5 + $0x10] sm:$0xff] }
  0x94   :  { %v79_v37 = vpop.permute.xlu1 %78 }
  0x95   :  { %v91_v52 = vmul.f32 %v88_v38, %v79_v37  ;;  %v290_v37 = vld [vmem:[%s806_s5 + $0x18] sm:$0xff] }
  0x96   :  { %v133_v50 = vpop.permute.xlu0 %132 }
  0x97   :  { %v146_v55 = vadd.f32 %v133_v50, %v122_v53  ;;  %v95_v57 = vadd.f32 %v91_v52, %v67_v54 }
  0x98   :  { %v83_v43 = vpop.permute.xlu1 %82 }
  0x99   :  { %v92_v60 = vmul.f32 %v88_v38, %v83_v43  ;;  %619 = vtanh.f32 %v146_v55  ;;  %v123_v1 = vadd.f32 %v119_v62, %v95_v57  ;;  %v414_v38 = vld [vmem:[%s807_s7] sm:$0xff]  ;;  %v415_v57 = vld [vmem:[%s807_s7 + $0x8] sm:$0xff] }
  0x9a   :  { %v164_v18 = vpop.permute.xlu0 %163 }
  0x9b   :  { %v96_v2 = vadd.f32 %v92_v60, %v68_v59 }
  0x9d   :  { %v111_v51 = vpop.permute.xlu1 %110 }
  0x9e   :  { %v120_v63 = vmul.f32 %v116_v41, %v111_v51  ;;  %v174_v25 = vpop.permute.xlu0 %173 }
  0xa0   :  { %v124_v4 = vadd.f32 %v120_v63, %v96_v2 }
  0xa2   :  { %v128_v58 = vpop.permute.xlu1 %127  ;;  %v294_v40 = vpop.permute.xlu0 %293 }
  0xa3   :  { %v145_v61 = vadd.f32 %v128_v58, %v121_v56  ;;  %v620_v7 = vpop.eup %619 }
  0xa5   :  { %621 = vtanh.f32 %v145_v61 }
  0xa6   :  { %v138_v0 = vpop.permute.xlu1 %137  ;;  %v304_v47 = vpop.permute.xlu0 %303 }
  0xa7   :  { %v147_v3 = vadd.f32 %v138_v0, %v123_v1 }
  0xa9   :  { %623 = vtanh.f32 %v147_v3 }
  0xaa   :  { %v143_v5 = vpop.permute.xlu1 %142  ;;  %v419_v60 = vpop.permute.xlu0 %418 }
  0xab   :  { %v148_v6 = vadd.f32 %v143_v5, %v124_v4 }
  0xad   :  { %625 = vtanh.f32 %v148_v6 }
  0xae   :  { %v169_v17 = vpop.permute.xlu1 %168 }
  0xaf   :  { %v622_v8 = vpop.eup %621 }
  0xb0   :  { %v584_v9 = vpack.c.bf16 %v620_v7, %v622_v8 }
  0xb2   :  { %585 = vmatprep.subr.bf16.mxu0 %v584_v9  ;;  %v179_v23 = vpop.permute.xlu1 %178 }
  0xb3   :  { %587 = vmatpush3.bf16.msra.mxu0 %v584_v9  ;;  %v624_v10 = vpop.eup %623 }
  0xb6   :  { %v299_v39 = vpop.permute.xlu1 %298 }
  0xb7   :  { %v626_v11 = vpop.eup %625 }
  0xb8   :  { %v588_v12 = vpack.c.bf16 %v626_v11, %v624_v10 }
  0xba   :  { %589 = vmatprep.subr.bf16.mxu0 %v588_v12  ;;  %v309_v45 = vpop.permute.xlu1 %308 }
  0xbb   :  { %591 = vmatpush3.bf16.msra.mxu0 %v588_v12 }
  0xbe   :  { %554 = vmatmul.mubr.msk.f32.vlgmr.msra.gmra.mrb[0].mxu0 %vm181_vm0, %v158_v13  ;;  %v424_v58 = vpop.permute.xlu1 %423 }
  0xbf   :  { %556 = vmatprep.mubr.msk.f32.mxu0 %vm181_vm0, %v159_v14 }
  0xc2   :  { %557 = vmatmul.mubr.msk.f32.gmra.mrb[2].mxu0 %vm181_vm0, %v160_v15 }
  0xc3   :  { %581 = vmatprep.mubr.msk.f32.mxu0 %vm181_vm0, %v414_v38 }
 0x191   :  { %v555_v19 = vpop.f32.mrb[0].mxu0 }
 0x192   :  { %v266_v20 = vadd.f32 %v555_v19, %v169_v17  ;;  %v260_v21 = vpop.f32.mrb[1].mxu0 }
 0x193   :  { %v261_v22 = vadd.f32 %v260_v21, %v164_v18 }
 0x194   :  { %627 = vtanh.f32 %v266_v20 }
 0x195   :  { %629 = vtanh.f32 %v261_v22  ;;  %v558_v24 = vpop.f32.mrb[2].mxu0 }
 0x196   :  { %v276_v26 = vadd.f32 %v558_v24, %v179_v23  ;;  %v270_v27 = vpop.f32.mrb[3].mxu0 }
 0x197   :  { %v271_v28 = vadd.f32 %v270_v27, %v174_v25 }
 0x198   :  { %631 = vtanh.f32 %v276_v26 }
 0x199   :  { %633 = vtanh.f32 %v271_v28 }
 0x19e   :  { %v628_v29 = vpop.eup %627 }
 0x19f   :  { %v630_v30 = vpop.eup %629 }
 0x1a0   :  { %v592_v31 = vpack.c.bf16 %v628_v29, %v630_v30 }
 0x1a2   :  { %v632_v32 = vpop.eup %631  ;;  %593 = vmatprep.subr.bf16.mxu1 %v592_v31 }
 0x1a3   :  { %v634_v33 = vpop.eup %633  ;;  %595 = vmatpush3.bf16.msra.mxu1 %v592_v31 }
 0x1a4   :  { %v596_v34 = vpack.c.bf16 %v632_v32, %v634_v33 }
 0x1a6   :  { %597 = vmatprep.subr.bf16.mxu1 %v596_v34 }
 0x1a7   :  { %599 = vmatpush3.bf16.msra.mxu1 %v596_v34 }
 0x1aa   :  { %568 = vmatmul.mubr.msk.f32.vlgmr.msra.gmra.mrb[0].mxu1 %vm181_vm0, %v288_v35 }
 0x1ab   :  { %570 = vmatprep.mubr.msk.f32.mxu1 %vm181_vm0, %v289_v36 }
 0x1ae   :  { %571 = vmatmul.mubr.msk.f32.gmra.mrb[2].mxu1 %vm181_vm0, %v290_v37 }
 0x27d   :  { %v569_v41 = vpop.f32.mrb[0].mxu1 }
 0x27e   :  { %v395_v42 = vadd.f32 %v569_v41, %v299_v39  ;;  %v389_v43 = vpop.f32.mrb[1].mxu1 }
 0x27f   :  { %v390_v44 = vadd.f32 %v389_v43, %v294_v40 }
 0x280   :  { %635 = vtanh.f32 %v395_v42 }
 0x281   :  { %637 = vtanh.f32 %v390_v44  ;;  %v572_v46 = vpop.f32.mrb[2].mxu1 }
 0x282   :  { %v405_v48 = vadd.f32 %v572_v46, %v309_v45  ;;  %v399_v49 = vpop.f32.mrb[3].mxu1 }
 0x283   :  { %v400_v50 = vadd.f32 %v399_v49, %v304_v47 }
 0x284   :  { %639 = vtanh.f32 %v405_v48 }
 0x285   :  { %641 = vtanh.f32 %v400_v50 }
 0x28a   :  { %v636_v51 = vpop.eup %635 }
 0x28b   :  { %v638_v52 = vpop.eup %637 }
 0x28c   :  { %v600_v53 = vpack.c.bf16 %v636_v51, %v638_v52 }
 0x28e   :  { %v640_v54 = vpop.eup %639  ;;  %601 = vmatprep.subr.bf16.mxu0 %v600_v53 }
 0x28f   :  { %v642_v55 = vpop.eup %641  ;;  %603 = vmatpush3.bf16.msra.mxu0 %v600_v53 }
 0x290   :  { %v604_v56 = vpack.c.bf16 %v640_v54, %v642_v55 }
 0x292   :  { %605 = vmatprep.subr.bf16.mxu0 %v604_v56 }
 0x293   :  { %607 = vmatpush3.bf16.msra.mxu0 %v604_v56 }
 0x296   :  { %582 = vmatmul.mubr.msk.f32.vlgmr.msra.gmra.mrb[4].mxu0 %vm181_vm0, %v415_v57 }
 0x369   :  { %v583_v59 = vpop.f32.mrb[4].mxu0 }
 0x36a   :  { %v504_v61 = vadd.f32 %v583_v59, %v424_v58  ;;  %v498_v62 = vpop.f32.mrb[5].mxu0 }
 0x36b   :  { %v499_v63 = vadd.f32 %v498_v62, %v419_v60 }
 0x36c   :  { %508 = vst [vmem:[%s808_s9 + $0x8] sm:$0xff] %v504_v61 }
 0x36d   :  { %507 = vst [vmem:[%s808_s9] sm:$0xff] %v499_v63 }

</bundles_post_ra>
